<compile_context>
chip_gen: v5e
topology: v5e:2x2
jax: 0.10.0
libtpu: 0.0.40
codegen_flags: <defaults>
</compile_context>

<pallas_src>
import functools

import jax
import jax.numpy as jnp
from jax.experimental import pallas as pl
from jax.experimental.pallas import tpu as pltpu


def conv_relu_kernel(x_ref, w_ref, b_ref, o_ref):
    # x_ref: (Nb, C_in, L)       batch slab handled by this grid step
    # w_ref: (C_out, C_in*K)     im2col weight, row r = k*C_in + c
    # b_ref: (C_out, 1)          f32 bias
    # o_ref: (Nb, C_out, L_out)  exact-width output (no lane padding)
    Nb, C_in, L = x_ref.shape
    C_out, CK = w_ref.shape
    K = CK // C_in
    pad = K // 2
    L_out = o_ref.shape[-1]

    w = w_ref[...]       # hoisted: (C_out, C_in*K)
    bias = b_ref[...]    # hoisted: (C_out, 1), f32

    # Nb is tiny and static -> this Python loop is fully unrolled.
    for i in range(Nb):
        x = x_ref[i]                                           # (C_in, L)
        if pad > 0:
            z = jnp.zeros((C_in, pad), dtype=x.dtype)
            xp = jnp.concatenate([z, x, z], axis=-1)           # (C_in, L + 2*pad)
        else:
            xp = x
        # im2col in registers: tap k is x shifted by (k - pad) with a zero halo.
        taps = [xp[:, k:k + L_out] for k in range(K)]          # K x (C_in, L_out)
        xcol = jnp.concatenate(taps, axis=0) if K > 1 else taps[0]   # (C_in*K, L_out)

        # Single MXU matmul per batch element, f32 accumulation.
        acc = jnp.dot(w, xcol, preferred_element_type=jnp.float32)  # (C_out, L_out)

        # Fused bias + ReLU epilogue.
        o_ref[i] = jnp.maximum(acc + bias, 0.0).astype(o_ref.dtype)


def _tensorcores_per_chip():
    # v5e / v6e: 1 TensorCore per chip; v7x: 2.  Conservative default = 1
    # (collapsed grid), which is always correct.
    try:
        kind = jax.devices()[0].device_kind.lower()
    except Exception:
        return 1
    return 2 if "v7" in kind else 1


@functools.partial(
    jax.jit, static_argnames=("require_bn", "require_mp", "require_dropout")
)
def conv_block_forward(x, w, b, *, require_bn=False, require_mp=False,
                       require_dropout=False):
    """x: (N, C_in, L), w: (C_out, C_in, K), b: (C_out,). Returns relu(conv1d(x))."""
    if require_bn or require_mp or require_dropout:
        # TODO(synk): BatchNorm1d / MaxPool1d / Dropout branches are not exercised
        # by the default constructor and are not implemented in this kernel.
        raise NotImplementedError("require_bn / require_mp / require_dropout")

    N, C_in, L = x.shape
    C_out, _, K = w.shape
    pad = K // 2
    L_out = L + 2 * pad - K + 1     # == L for odd K (PyTorch Conv1d padding=K//2)

    # Grid collapse: 1 step on single-TC chips; one step per TC on v7x when N
    # divides evenly.
    cores = _tensorcores_per_chip()
    n_steps = cores if (cores > 1 and N % cores == 0) else 1
    Nb = N // n_steps

    # im2col weight layout: W2[o, k*C_in + c] = w[o, c, k]  (matches xcol rows).
    w2 = jnp.transpose(w, (0, 2, 1)).reshape(C_out, K * C_in).astype(x.dtype)
    b2 = b.astype(jnp.float32).reshape(C_out, 1)

    out = pl.pallas_call(
        conv_relu_kernel,
        out_shape=jax.ShapeDtypeStruct((N, C_out, L_out), x.dtype),
        grid_spec=pltpu.PrefetchScalarGridSpec(
            num_scalar_prefetch=0,
            grid=(n_steps,),
            in_specs=[
                pl.BlockSpec((Nb, C_in, L), lambda g: (g, 0, 0)),
                pl.BlockSpec((C_out, K * C_in), lambda g: (0, 0)),
                pl.BlockSpec((C_out, 1), lambda g: (0, 0)),
            ],
            out_specs=pl.BlockSpec((Nb, C_out, L_out), lambda g: (g, 0, 0)),
        ),
        compiler_params=pltpu.CompilerParams(dimension_semantics=("parallel",)),
    )(x, w2, b2)
    return out


def _reference(x, w, b):
    pad = w.shape[-1] // 2
    y = jax.lax.conv_general_dilated(
        x, w, window_strides=(1,), padding=[(pad, pad)],
        dimension_numbers=("NCH", "OIH", "NCH"),
    )
    return jnp.maximum(y + b[None, :, None], 0.0)


if __name__ == "__main__":
    # Small shapes consistent with Conv1d(in_channels=4, out_channels=8, kernel_size=3)
    N, C_in, C_out, K, L = 2, 4, 8, 3, 16

    key = jax.random.PRNGKey(0)
    kx, kw, kb = jax.random.split(key, 3)

    x = jax.random.normal(kx, (N, C_in, L), dtype=jnp.float32)
    # Deterministic parameter init (PyTorch-style uniform bound 1/sqrt(C_in*K))
    bound = 1.0 / jnp.sqrt(jnp.float32(C_in * K))
    w = jax.random.uniform(kw, (C_out, C_in, K), jnp.float32, -bound, bound)
    b = jax.random.uniform(kb, (C_out,), jnp.float32, -bound, bound)

    out = conv_block_forward(x, w, b)
    out = jax.block_until_ready(out)

    ref = _reference(x, w, b)
    assert out.shape == (N, C_out, L), out.shape
    assert jnp.allclose(out, ref, atol=1e-5, rtol=1e-5), float(jnp.max(jnp.abs(out - ref)))

    print("KERNEL_OK")
</pallas_src>

<mosaic_0001>
module attributes {stable_mosaic.version = 11 : i64} {
  func.func @conv_relu_kernel(%arg0: i32, %arg1: memref<2x4x16xf32, #tpu.memory_space<vmem>>, %arg2: memref<8x12xf32, #tpu.memory_space<vmem>>, %arg3: memref<8x1xf32, #tpu.memory_space<vmem>>, %arg4: memref<2x8x16xf32, #tpu.memory_space<vmem>>) attributes {dimension_semantics = [#tpu.dimension_semantics<parallel>], iteration_bounds = array<i64: 1>, scalar_prefetch = 0 : i64, scratch_operands = 0 : i64, tpu.core_type = #tpu.core_type<tc>, window_params = [{transform_indices = @transform_0, window_bounds = array<i64: 2, 4, 16>}, {pipeline_mode = #tpu.pipeline_mode<synchronous>, transform_indices = @transform_1, window_bounds = array<i64: 8, 12>}, {pipeline_mode = #tpu.pipeline_mode<synchronous>, transform_indices = @transform_2, window_bounds = array<i64: 8, 1>}, {transform_indices = @transform_3, window_bounds = array<i64: 2, 8, 16>}]} {
    %c0 = arith.constant 0 : index
    %c0_0 = arith.constant 0 : index
    %0 = vector.load %arg2[%c0, %c0_0] : memref<8x12xf32, #tpu.memory_space<vmem>>, vector<8x12xf32>
    %c0_1 = arith.constant 0 : index
    %c0_2 = arith.constant 0 : index
    %1 = vector.load %arg3[%c0_1, %c0_2] : memref<8x1xf32, #tpu.memory_space<vmem>>, vector<8x1xf32>
    %c0_3 = arith.constant 0 : index
    %c0_4 = arith.constant 0 : index
    %c0_5 = arith.constant 0 : index
    %2 = vector.load %arg1[%c0_3, %c0_4, %c0_5] : memref<2x4x16xf32, #tpu.memory_space<vmem>>, vector<1x4x16xf32>
    %3 = vector.shape_cast %2 : vector<1x4x16xf32> to vector<4x16xf32>
    %cst = arith.constant 0.000000e+00 : f32
    %4 = vector.broadcast %cst : f32 to vector<4x1xf32>
    %5 = tpu.concatenate %4, %3, %4 in 1 : vector<4x1xf32>, vector<4x16xf32>, vector<4x1xf32> -> vector<4x18xf32>
    %6 = vector.extract_strided_slice %5 {offsets = [0, 0], sizes = [4, 16], strides = [1, 1]} : vector<4x18xf32> to vector<4x16xf32>
    %7 = vector.extract_strided_slice %5 {offsets = [0, 1], sizes = [4, 16], strides = [1, 1]} : vector<4x18xf32> to vector<4x16xf32>
    %8 = vector.extract_strided_slice %5 {offsets = [0, 2], sizes = [4, 16], strides = [1, 1]} : vector<4x18xf32> to vector<4x16xf32>
    %9 = tpu.concatenate %6, %7, %8 in 0 : vector<4x16xf32>, vector<4x16xf32>, vector<4x16xf32> -> vector<12x16xf32>
    %cst_6 = arith.constant dense<0.000000e+00> : vector<8x16xf32>
    %10 = tpu.matmul %0, %9, %cst_6 {dimension_numbers = #tpu.dot_dimension_numbers<[1], [0], [0], [1], [0, 0, 1, 1], [], []>} : vector<8x12xf32>, vector<12x16xf32>, vector<8x16xf32> -> vector<8x16xf32>
    %11 = vector.broadcast %1 : vector<8x1xf32> to vector<8x16xf32>
    %12 = arith.addf %10, %11 : vector<8x16xf32>
    %cst_7 = arith.constant 0.000000e+00 : f32
    %13 = vector.broadcast %cst_7 : f32 to vector<8x16xf32>
    %14 = arith.maximumf %12, %13 : vector<8x16xf32>
    %c0_8 = arith.constant 0 : index
    %c0_9 = arith.constant 0 : index
    %c0_10 = arith.constant 0 : index
    %15 = vector.load %arg4[%c0_8, %c0_9, %c0_10] : memref<2x8x16xf32, #tpu.memory_space<vmem>>, vector<1x8x16xf32>
    %16 = vector.shape_cast %15 : vector<1x8x16xf32> to vector<8x16xf32>
    %17 = vector.shape_cast %14 : vector<8x16xf32> to vector<1x8x16xf32>
    tpu.vector_store %arg4[%c0_8, %c0_9, %c0_10], %17 {strides = array<i32>} : memref<2x8x16xf32, #tpu.memory_space<vmem>>, vector<1x8x16xf32>,
    %c1 = arith.constant 1 : index
    %c0_11 = arith.constant 0 : index
    %c0_12 = arith.constant 0 : index
    %18 = vector.load %arg1[%c1, %c0_11, %c0_12] : memref<2x4x16xf32, #tpu.memory_space<vmem>>, vector<1x4x16xf32>
    %19 = vector.shape_cast %18 : vector<1x4x16xf32> to vector<4x16xf32>
    %cst_13 = arith.constant 0.000000e+00 : f32
    %20 = vector.broadcast %cst_13 : f32 to vector<4x1xf32>
    %21 = tpu.concatenate %20, %19, %20 in 1 : vector<4x1xf32>, vector<4x16xf32>, vector<4x1xf32> -> vector<4x18xf32>
    %22 = vector.extract_strided_slice %21 {offsets = [0, 0], sizes = [4, 16], strides = [1, 1]} : vector<4x18xf32> to vector<4x16xf32>
    %23 = vector.extract_strided_slice %21 {offsets = [0, 1], sizes = [4, 16], strides = [1, 1]} : vector<4x18xf32> to vector<4x16xf32>
    %24 = vector.extract_strided_slice %21 {offsets = [0, 2], sizes = [4, 16], strides = [1, 1]} : vector<4x18xf32> to vector<4x16xf32>
    %25 = tpu.concatenate %22, %23, %24 in 0 : vector<4x16xf32>, vector<4x16xf32>, vector<4x16xf32> -> vector<12x16xf32>
    %cst_14 = arith.constant dense<0.000000e+00> : vector<8x16xf32>
    %26 = tpu.matmul %0, %25, %cst_14 {dimension_numbers = #tpu.dot_dimension_numbers<[1], [0], [0], [1], [0, 0, 1, 1], [], []>} : vector<8x12xf32>, vector<12x16xf32>, vector<8x16xf32> -> vector<8x16xf32>
    %27 = vector.broadcast %1 : vector<8x1xf32> to vector<8x16xf32>
    %28 = arith.addf %26, %27 : vector<8x16xf32>
    %cst_15 = arith.constant 0.000000e+00 : f32
    %29 = vector.broadcast %cst_15 : f32 to vector<8x16xf32>
    %30 = arith.maximumf %28, %29 : vector<8x16xf32>
    %c1_16 = arith.constant 1 : index
    %c0_17 = arith.constant 0 : index
    %c0_18 = arith.constant 0 : index
    %31 = vector.load %arg4[%c1_16, %c0_17, %c0_18] : memref<2x8x16xf32, #tpu.memory_space<vmem>>, vector<1x8x16xf32>
    %32 = vector.shape_cast %31 : vector<1x8x16xf32> to vector<8x16xf32>
    %33 = vector.shape_cast %30 : vector<8x16xf32> to vector<1x8x16xf32>
    tpu.vector_store %arg4[%c1_16, %c0_17, %c0_18], %33 {strides = array<i32>} : memref<2x8x16xf32, #tpu.memory_space<vmem>>, vector<1x8x16xf32>,
    return
  }
  func.func @transform_0(%arg0: i32) -> (i32, i32, i32) {
    %c0_i32 = arith.constant 0 : i32
    %c0_i32_0 = arith.constant 0 : i32
    %c0_i32_1 = arith.constant 0 : i32
    return %arg0, %c0_i32, %c0_i32_0 : i32, i32, i32
  }
  func.func @transform_1(%arg0: i32) -> (i32, i32) {
    %c0_i32 = arith.constant 0 : i32
    %c0_i32_0 = arith.constant 0 : i32
    %c0_i32_1 = arith.constant 0 : i32
    return %c0_i32, %c0_i32_0 : i32, i32
  }
  func.func @transform_2(%arg0: i32) -> (i32, i32) {
    %c0_i32 = arith.constant 0 : i32
    %c0_i32_0 = arith.constant 0 : i32
    %c0_i32_1 = arith.constant 0 : i32
    return %c0_i32, %c0_i32_0 : i32, i32
  }
  func.func @transform_3(%arg0: i32) -> (i32, i32, i32) {
    %c0_i32 = arith.constant 0 : i32
    %c0_i32_0 = arith.constant 0 : i32
    %c0_i32_1 = arith.constant 0 : i32
    return %arg0, %c0_i32, %c0_i32_0 : i32, i32, i32
  }
}

</mosaic_0001>

<bundles_post_ra>
// kernel: conv_block_forward.1
= control target key start
LH: loop header
LB: loop body
LE: loop exit
PB: predicated region body
PF: predicated region fallthrough
CT: control target
= control target key end

     0   :  { %s173_s14 = smov 1   ;;  %s215_s0 = inlined_call_operand.vmem [shape: f32[2,4,16], index: 0, kind: input, shape index: {}]   ;;  %s216_s1 = inlined_call_operand.vmem [shape: f32[8,12], index: 1, kind: input, shape index: {}]   ;;  %s217_s2 = inlined_call_operand.vmem [shape: f32[8,1], index: 2, kind: input, shape index: {}]   ;;  %s218_s3 = inlined_call_operand.hbm [shape: f32[2,8,16], index: 3, kind: output, shape index: {}]  }
   0x1   :  { %v17_v0 = vld [vmem:[%s215_s0] sm:$0xf] }
   0x2   :  { %19 = vrot.lane.b32.xlu0 %v17_v0, %s173_s14 }
   0x3   :  { %8 = vsyncpa [#allocation3], 0  ;;  %v130_v1 = vld [vmem:[%s215_s0 + $0x4] sm:$0xf]  ;;  %vm22_vm0 = vcmask 7168   ;;  %vm24_vm1 = vcmask 138240  }
   0x4   :  { %s174_s17 = smov 126   ;;  %s175_s18 = smov 127   ;;  %v16_v11 = vld [vmem:[%s217_s2] sm:$0xff]  ;;  %v176_v12 = vmov 0   ;;  %vm33_vm2 = vcmask 1043456   ;;  %vm40_vm3 = vcmask 97280  }
   0x5   :  { %145 = vset.pattern.permute.xlu2 %v176_v12  ;;  %146 = vset.pattern.permute.xlu0 %v176_v12  ;;  %v15_v16 = vld [vmem:[%s216_s1] sm:$0xff]  ;;  %vm67_vm4 = vcmask 130048   ;;  %s177_s2 = smov [#allocation2]   ;;  %s116_s24 = sshll.u32 %s218_s3, 4  ;;  %s117_s24 = int_to_ptr.hbm [resolvable:$true] %s116_s24 }
   0x6   :  { %s114_s22 = sshll.u32 %s177_s2, 4  ;;  %s178_s25 = smov 128   ;;  %s115_s22 = int_to_ptr.vmem [resolvable:$true] %s114_s22 }
   0x7   :  { %s179_s26 = smov 8  }
   0xa   :  { %72 = vrot.lane.b32.xlu0 %v130_v1, %s173_s14 }
  0x74   :  { %v20_v2 = vpop.permute.xlu0 %19 }
  0x75   :  { %v23_v3 = vsel %vm22_vm0, 0.0, %v20_v2 }
  0x76   :  { %v25_v4 = vsel %vm24_vm1, %v23_v3, 0.0 }
  0x77   :  { %31 = vrot.lane.b32.xlu1 %v25_v4, %s174_s17  ;;  %v27_v8 = vrot.slane %v25_v4, 4 }
  0x7c   :  { %v73_v5 = vpop.permute.xlu0 %72 }
  0x7d   :  { %v75_v6 = vsel %vm22_vm0, 0.0, %v73_v5 }
  0x7e   :  { %v76_v7 = vsel %vm24_vm1, %v75_v6, 0.0 }
  0x7f   :  { %82 = vrot.lane.b32.xlu1 %v76_v7, %s174_s17  ;;  %v78_v9 = vrot.slane %v76_v7, 4 }
  0x81   :  { %v140_v10 = vpack.i.bf16 %v78_v9, %v27_v8 }
  0x83   :  { %141 = vrot.lane.b32.xlu2 %v140_v10, %s175_s18 }
  0x8b   :  { %37 = vperm.xlu2 %145, %v16_v11  }
  0xdd   :  { %v142_v13 = vpop.permute.xlu2 %141 }
  0xde   :  { %v143_v14 = vunpack.i.l.bf16 %v142_v13  ;;  %v144_v18 = vunpack.i.h.bf16 %v142_v13 }
  0xe0   :  { %v34_v17 = vsel %vm33_vm2, %v25_v4, %v143_v14  ;;  %v84_v20 = vsel %vm33_vm2, %v76_v7, %v144_v18 }
  0xe5   :  { %v38_v21 = vpop.permute.xlu2 %37 }
  0xe9   :  { %v32_v15 = vpop.permute.xlu1 %31 }
  0xea   :  { %128 = vmatpush.msk.msra.mxu0 %vm33_vm2, %v32_v15 }
  0xec   :  { %61 = vmatpush.msra.mxu0 %v34_v17 }
  0xed   :  { %129 = vmatmul.msk.f32.vlgmr.msra.gmra.mxu0 %vm40_vm3, %v15_v16 }
  0xf1   :  { %v83_v19 = vpop.permute.xlu1 %82 }
  0xf2   :  { %131 = vmatpush.msk.msra.mxu1 %vm33_vm2, %v83_v19 }
  0xf4   :  { %102 = vmatpush.msra.mxu1 %v84_v20 }
  0xf5   :  { %132 = vmatmul.msk.f32.vlgmr.msra.gmra.mxu1 %vm40_vm3, %v15_v16 }
 0x16a   :  { %v63_v22 = vpop.f32.mrf.mxu0 }
 0x16b   :  { %v64_v23 = vadd.f32 %v63_v22, %v38_v21 }
 0x16d   :  { %v66_v24 = vmax.f32 %v64_v23, 0.0 }
 0x16f   :  { %68 = vst.msk [vmem:[#allocation2] sm:$0xff] %vm67_vm4, %v66_v24 }
 0x172   :  { %v104_v25 = vpop.f32.mrf.mxu1 }
 0x173   :  { %v105_v26 = vadd.f32 %v104_v25, %v38_v21 }
 0x175   :  { %v107_v27 = vmax.f32 %v105_v26, 0.0 }
 0x177   :  { %109 = vst.msk [vmem:[#allocation2 + $0x8] sm:$0xff] %vm67_vm4, %v107_v27 }
 0x178   :  { %122 = dma.vmem_to_hbm [thread:$0]  %s115_s22, 256, %s117_s24, [#allocation3], %s178_s25, %s178_s25, %s179_s26  }
 0x179   :  { %171 = dma.done.wait [#allocation3], 256  }
 0x17a   :  { %172 = vsyncadd [#allocation3], 4294967040 }
 0x17b   :  { %127 = vsyncpa [#allocation3], 1 }

</bundles_post_ra>
